<compile_context>
chip_gen: v6e
topology: v6e:2x2x1
jax: 0.10.0
libtpu: 0.0.40
codegen_flags: <defaults>
</compile_context>

<pallas_src>
import math
import jax
import jax.numpy as jnp
from jax.experimental import pallas as pl
from jax.experimental.pallas import tpu as pltpu

# ---- model hyper-parameters (small, consistent with the module) ----
B = 2           # batch
S = 8           # sequence length (== one f32 sublane tile -> free row slices)
D = 32          # input_dim
BOND = 32       # bond_dim
H = 4           # num_heads
DK = BOND // H  # d_k per head (= 8)
LN_EPS = 1e-5   # PyTorch nn.LayerNorm default


def encoder_layer_kernel(x_ref, wqkv_ref, wo_ref, pb_ref, out_ref):
    # x_ref: (B*S, D) f32 -- whole (flattened) batch in one invocation.
    x = x_ref[...]                                  # keep f32 for residual / LayerNorm
    xb = x.astype(jnp.bfloat16)

    # ONE wide projection matmul for Q|K|V of all heads: (16,32)@(32,96) -> (16,96).
    # 1/sqrt(d_k) is already folded into the Q columns of wqkv (done at load time).
    qkv = jnp.dot(xb, wqkv_ref[...], preferred_element_type=jnp.float32)

    per_batch = []
    for b in range(B):
        r0 = b * S          # multiple of 8 -> sublane-tile-aligned (free) row slices
        heads = []
        for h in range(H):
            c = h * DK      # 8-lane per-head slice of the wide projection result
            qb = qkv[r0:r0 + S, c:c + DK]
            kb = qkv[r0:r0 + S, BOND + c:BOND + c + DK]
            vb = qkv[r0:r0 + S, 2 * BOND + c:2 * BOND + c + DK]

            # scores = qb @ kb.T (scale pre-folded); bf16 operands, f32 accumulate.
            s = jax.lax.dot_general(
                qb.astype(jnp.bfloat16), kb.astype(jnp.bfloat16),
                (((1,), (1,)), ((), ())),
                preferred_element_type=jnp.float32)                      # (S, S)

            m = jnp.max(s, axis=-1, keepdims=True)
            e = jnp.exp(s - m)
            # EUP approximate reciprocal: frees the VALU, error << tolerance.
            p = e * pl.reciprocal(jnp.sum(e, axis=-1, keepdims=True), approx=True)

            heads.append(jnp.dot(p.astype(jnp.bfloat16),
                                 vb.astype(jnp.bfloat16),
                                 preferred_element_type=jnp.float32))    # (S, DK)

        # Lane-concat of the H head outputs (XLU slot has slack).
        per_batch.append(jnp.concatenate(heads, axis=-1))                # (S, BOND)

    # Sublane-concat of the batch (vreg-boundary aligned -> cheap).
    concat = jnp.concatenate(per_batch, axis=0)                          # (B*S, BOND)

    # SINGLE output projection: (16,32)@(32,32), bf16 operands, f32 accumulate.
    attn = jnp.dot(concat.astype(jnp.bfloat16), wo_ref[...],
                   preferred_element_type=jnp.float32)                   # (B*S, D)

    params = pb_ref[...]                             # (3, D): [bo; gamma; beta]
    bias = params[0:1, :]
    gamma = params[1:2, :]
    beta = params[2:3, :]

    # residual + out-proj bias + LayerNorm over last dim (all f32).
    y = x + attn + bias
    mean = jnp.mean(y, axis=-1, keepdims=True)
    var = jnp.mean(jnp.square(y - mean), axis=-1, keepdims=True)
    out_ref[...] = ((y - mean) * jax.lax.rsqrt(var + LN_EPS)
                    * gamma + beta).astype(out_ref.dtype)


def prepare_params(wq, wk, wv, wo, bo, gamma, beta):
    """One-time parameter preprocessing (at load time, NOT on the per-call path).

    - Fuses Wq|Wk|Wv into a single (D, 3*BOND) operand (head h occupies lanes
      h*DK:(h+1)*DK of each BOND-wide section, matching the PyTorch .view()).
    - Folds 1/sqrt(d_k) into the Q columns.
    - Casts matmul weights to bf16 (MXU-native on v5e/v6e/v7x).
    - Packs bo / LayerNorm gamma / beta into one (3, D) f32 operand.
    """
    inv_sqrt_dk = 1.0 / math.sqrt(DK)
    wqkv = jnp.concatenate([wq * inv_sqrt_dk, wk, wv], axis=1).astype(jnp.bfloat16)
    wo_b = wo.astype(jnp.bfloat16)                                       # (BOND, D)
    pb = jnp.concatenate([bo, gamma, beta], axis=0).astype(jnp.float32)  # (3, D)
    return wqkv, wo_b, pb


@jax.jit
def encoder_layer(src, wqkv, wo_b, pb):
    """src: (B, S, D) f32; wqkv/wo_b/pb from prepare_params. Returns (B, S, D)."""
    x_flat = src.reshape(B * S, D)   # view; only per-call wrapper op

    out_flat = pl.pallas_call(
        encoder_layer_kernel,
        out_shape=jax.ShapeDtypeStruct((B * S, D), src.dtype),
        in_specs=[
            pl.BlockSpec(memory_space=pltpu.MemorySpace.VMEM),   # x     (B*S, D)   f32
            pl.BlockSpec(memory_space=pltpu.MemorySpace.VMEM),   # Wqkv  (D, 3*BOND) bf16
            pl.BlockSpec(memory_space=pltpu.MemorySpace.VMEM),   # Wo    (BOND, D)  bf16
            pl.BlockSpec(memory_space=pltpu.MemorySpace.VMEM),   # [bo; gamma; beta] f32
        ],
        out_specs=pl.BlockSpec(memory_space=pltpu.MemorySpace.VMEM),
    )(x_flat, wqkv, wo_b, pb)

    return out_flat.reshape(B, S, D)


def reference(src, wq, wk, wv, wo, bo, gamma, beta):
    """Pure-JAX f32 reference mirroring the PyTorch forward (exact softmax division)."""
    x = src.astype(jnp.float32)
    q = (x @ wq).reshape(B, S, H, DK).transpose(0, 2, 1, 3)
    k = (x @ wk).reshape(B, S, H, DK).transpose(0, 2, 1, 3)
    v = (x @ wv).reshape(B, S, H, DK).transpose(0, 2, 1, 3)
    scores = jnp.einsum('bhqd,bhkd->bhqk', q, k) / math.sqrt(DK)
    p = jax.nn.softmax(scores, axis=-1)
    o = jnp.einsum('bhqk,bhkd->bhqd', p, v)
    concat = o.transpose(0, 2, 1, 3).reshape(B, S, BOND)
    attn_out = concat @ wo + bo[0]
    y = x + attn_out
    mean = jnp.mean(y, axis=-1, keepdims=True)
    var = jnp.mean((y - mean) ** 2, axis=-1, keepdims=True)
    return (y - mean) / jnp.sqrt(var + LN_EPS) * gamma[0] + beta[0]


if __name__ == "__main__":
    key = jax.random.PRNGKey(0)
    ks = jax.random.split(key, 6)

    src = jax.random.normal(ks[0], (B, S, D), dtype=jnp.float32)

    # Deterministic parameter init (synthetic; shapes match nn.Linear/nn.LayerNorm,
    # stored as (in, out) so the kernel computes x @ W == PyTorch x @ W.T).
    scale_in = 1.0 / math.sqrt(D)
    scale_bond = 1.0 / math.sqrt(BOND)
    wq = jax.random.uniform(ks[1], (D, BOND), minval=-scale_in, maxval=scale_in)
    wk = jax.random.uniform(ks[2], (D, BOND), minval=-scale_in, maxval=scale_in)
    wv = jax.random.uniform(ks[3], (D, BOND), minval=-scale_in, maxval=scale_in)
    wo = jax.random.uniform(ks[4], (BOND, D), minval=-scale_bond, maxval=scale_bond)
    bo = jax.random.uniform(ks[5], (1, D), minval=-scale_bond, maxval=scale_bond)
    gamma = jnp.ones((1, D), jnp.float32)    # nn.LayerNorm default weight
    beta = jnp.zeros((1, D), jnp.float32)    # nn.LayerNorm default bias

    # One-time preprocessing (parameter-load time, off the hot path).
    wqkv, wo_b, pb = prepare_params(wq, wk, wv, wo, bo, gamma, beta)

    out = encoder_layer(src, wqkv, wo_b, pb)
    out = jax.block_until_ready(out)

    ref = reference(src, wq, wk, wv, wo, bo, gamma, beta)
    assert out.shape == (B, S, D)
    # Tolerance covers the bf16 MXU operands and the EUP approximate reciprocal in
    # the softmax; everything else (softmax, residual, LayerNorm) is exact f32.
    assert jnp.allclose(out, ref, atol=2e-2, rtol=2e-2), "mismatch vs reference"

    print("KERNEL_OK")
</pallas_src>

<mosaic_0001>
module attributes {stable_mosaic.version = 11 : i64} {
  func.func @encoder_layer_kernel(%arg0: memref<16x32xf32, #tpu.memory_space<vmem>>, %arg1: memref<32x96xbf16, #tpu.memory_space<vmem>>, %arg2: memref<32x32xbf16, #tpu.memory_space<vmem>>, %arg3: memref<3x32xf32, #tpu.memory_space<vmem>>, %arg4: memref<16x32xf32, #tpu.memory_space<vmem>>) attributes {dimension_semantics = [], scalar_prefetch = 0 : i64, scratch_operands = 0 : i64, tpu.core_type = #tpu.core_type<tc>} {
    %c0 = arith.constant 0 : index
    %c0_0 = arith.constant 0 : index
    %0 = vector.load %arg0[%c0, %c0_0] : memref<16x32xf32, #tpu.memory_space<vmem>>, vector<16x32xf32>
    %1 = arith.truncf %0 : vector<16x32xf32> to vector<16x32xbf16>
    %c0_1 = arith.constant 0 : index
    %c0_2 = arith.constant 0 : index
    %2 = vector.load %arg1[%c0_1, %c0_2] : memref<32x96xbf16, #tpu.memory_space<vmem>>, vector<32x96xbf16>
    %cst = arith.constant dense<0.000000e+00> : vector<16x96xf32>
    %3 = tpu.matmul %1, %2, %cst {dimension_numbers = #tpu.dot_dimension_numbers<[1], [0], [0], [1], [0, 0, 1, 1], [], []>} : vector<16x32xbf16>, vector<32x96xbf16>, vector<16x96xf32> -> vector<16x96xf32>
    %4 = vector.extract_strided_slice %3 {offsets = [0, 0], sizes = [8, 8], strides = [1, 1]} : vector<16x96xf32> to vector<8x8xf32>
    %5 = vector.extract_strided_slice %3 {offsets = [0, 32], sizes = [8, 8], strides = [1, 1]} : vector<16x96xf32> to vector<8x8xf32>
    %6 = vector.extract_strided_slice %3 {offsets = [0, 64], sizes = [8, 8], strides = [1, 1]} : vector<16x96xf32> to vector<8x8xf32>
    %7 = arith.truncf %4 : vector<8x8xf32> to vector<8x8xbf16>
    %8 = arith.truncf %5 : vector<8x8xf32> to vector<8x8xbf16>
    %cst_3 = arith.constant dense<0.000000e+00> : vector<8x8xf32>
    %9 = tpu.matmul %7, %8, %cst_3 {dimension_numbers = #tpu.dot_dimension_numbers<[1], [1], [0], [0], [0, 0, 1, 0], [], []>} : vector<8x8xbf16>, vector<8x8xbf16>, vector<8x8xf32> -> vector<8x8xf32>
    %cst_4 = arith.constant dense<0xFF800000> : vector<8xf32>
    %10 = vector.multi_reduction <maximumf>, %9, %cst_4 [1] : vector<8x8xf32> to vector<8xf32>
    %11 = vector.shape_cast %10 : vector<8xf32> to vector<8x1xf32>
    %12 = vector.broadcast %11 : vector<8x1xf32> to vector<8x8xf32>
    %13 = arith.subf %9, %12 : vector<8x8xf32>
    %14 = math.exp %13 : vector<8x8xf32>
    %cst_5 = arith.constant dense<0.000000e+00> : vector<8xf32>
    %15 = vector.multi_reduction <add>, %14, %cst_5 [1] : vector<8x8xf32> to vector<8xf32>
    %16 = vector.shape_cast %15 : vector<8xf32> to vector<8x1xf32>
    %17 = tpu.reciprocal %16 {approx = true} : vector<8x1xf32> -> vector<8x1xf32>
    %18 = vector.broadcast %17 : vector<8x1xf32> to vector<8x8xf32>
    %19 = arith.mulf %14, %18 : vector<8x8xf32>
    %20 = arith.truncf %19 : vector<8x8xf32> to vector<8x8xbf16>
    %21 = arith.truncf %6 : vector<8x8xf32> to vector<8x8xbf16>
    %cst_6 = arith.constant dense<0.000000e+00> : vector<8x8xf32>
    %22 = tpu.matmul %20, %21, %cst_6 {dimension_numbers = #tpu.dot_dimension_numbers<[1], [0], [0], [1], [0, 0, 1, 1], [], []>} : vector<8x8xbf16>, vector<8x8xbf16>, vector<8x8xf32> -> vector<8x8xf32>
    %23 = vector.extract_strided_slice %3 {offsets = [0, 8], sizes = [8, 8], strides = [1, 1]} : vector<16x96xf32> to vector<8x8xf32>
    %24 = vector.extract_strided_slice %3 {offsets = [0, 40], sizes = [8, 8], strides = [1, 1]} : vector<16x96xf32> to vector<8x8xf32>
    %25 = vector.extract_strided_slice %3 {offsets = [0, 72], sizes = [8, 8], strides = [1, 1]} : vector<16x96xf32> to vector<8x8xf32>
    %26 = arith.truncf %23 : vector<8x8xf32> to vector<8x8xbf16>
    %27 = arith.truncf %24 : vector<8x8xf32> to vector<8x8xbf16>
    %cst_7 = arith.constant dense<0.000000e+00> : vector<8x8xf32>
    %28 = tpu.matmul %26, %27, %cst_7 {dimension_numbers = #tpu.dot_dimension_numbers<[1], [1], [0], [0], [0, 0, 1, 0], [], []>} : vector<8x8xbf16>, vector<8x8xbf16>, vector<8x8xf32> -> vector<8x8xf32>
    %cst_8 = arith.constant dense<0xFF800000> : vector<8xf32>
    %29 = vector.multi_reduction <maximumf>, %28, %cst_8 [1] : vector<8x8xf32> to vector<8xf32>
    %30 = vector.shape_cast %29 : vector<8xf32> to vector<8x1xf32>
    %31 = vector.broadcast %30 : vector<8x1xf32> to vector<8x8xf32>
    %32 = arith.subf %28, %31 : vector<8x8xf32>
    %33 = math.exp %32 : vector<8x8xf32>
    %cst_9 = arith.constant dense<0.000000e+00> : vector<8xf32>
    %34 = vector.multi_reduction <add>, %33, %cst_9 [1] : vector<8x8xf32> to vector<8xf32>
    %35 = vector.shape_cast %34 : vector<8xf32> to vector<8x1xf32>
    %36 = tpu.reciprocal %35 {approx = true} : vector<8x1xf32> -> vector<8x1xf32>
    %37 = vector.broadcast %36 : vector<8x1xf32> to vector<8x8xf32>
    %38 = arith.mulf %33, %37 : vector<8x8xf32>
    %39 = arith.truncf %38 : vector<8x8xf32> to vector<8x8xbf16>
    %40 = arith.truncf %25 : vector<8x8xf32> to vector<8x8xbf16>
    %cst_10 = arith.constant dense<0.000000e+00> : vector<8x8xf32>
    %41 = tpu.matmul %39, %40, %cst_10 {dimension_numbers = #tpu.dot_dimension_numbers<[1], [0], [0], [1], [0, 0, 1, 1], [], []>} : vector<8x8xbf16>, vector<8x8xbf16>, vector<8x8xf32> -> vector<8x8xf32>
    %42 = vector.extract_strided_slice %3 {offsets = [0, 16], sizes = [8, 8], strides = [1, 1]} : vector<16x96xf32> to vector<8x8xf32>
    %43 = vector.extract_strided_slice %3 {offsets = [0, 48], sizes = [8, 8], strides = [1, 1]} : vector<16x96xf32> to vector<8x8xf32>
    %44 = vector.extract_strided_slice %3 {offsets = [0, 80], sizes = [8, 8], strides = [1, 1]} : vector<16x96xf32> to vector<8x8xf32>
    %45 = arith.truncf %42 : vector<8x8xf32> to vector<8x8xbf16>
    %46 = arith.truncf %43 : vector<8x8xf32> to vector<8x8xbf16>
    %cst_11 = arith.constant dense<0.000000e+00> : vector<8x8xf32>
    %47 = tpu.matmul %45, %46, %cst_11 {dimension_numbers = #tpu.dot_dimension_numbers<[1], [1], [0], [0], [0, 0, 1, 0], [], []>} : vector<8x8xbf16>, vector<8x8xbf16>, vector<8x8xf32> -> vector<8x8xf32>
    %cst_12 = arith.constant dense<0xFF800000> : vector<8xf32>
    %48 = vector.multi_reduction <maximumf>, %47, %cst_12 [1] : vector<8x8xf32> to vector<8xf32>
    %49 = vector.shape_cast %48 : vector<8xf32> to vector<8x1xf32>
    %50 = vector.broadcast %49 : vector<8x1xf32> to vector<8x8xf32>
    %51 = arith.subf %47, %50 : vector<8x8xf32>
    %52 = math.exp %51 : vector<8x8xf32>
    %cst_13 = arith.constant dense<0.000000e+00> : vector<8xf32>
    %53 = vector.multi_reduction <add>, %52, %cst_13 [1] : vector<8x8xf32> to vector<8xf32>
    %54 = vector.shape_cast %53 : vector<8xf32> to vector<8x1xf32>
    %55 = tpu.reciprocal %54 {approx = true} : vector<8x1xf32> -> vector<8x1xf32>
    %56 = vector.broadcast %55 : vector<8x1xf32> to vector<8x8xf32>
    %57 = arith.mulf %52, %56 : vector<8x8xf32>
    %58 = arith.truncf %57 : vector<8x8xf32> to vector<8x8xbf16>
    %59 = arith.truncf %44 : vector<8x8xf32> to vector<8x8xbf16>
    %cst_14 = arith.constant dense<0.000000e+00> : vector<8x8xf32>
    %60 = tpu.matmul %58, %59, %cst_14 {dimension_numbers = #tpu.dot_dimension_numbers<[1], [0], [0], [1], [0, 0, 1, 1], [], []>} : vector<8x8xbf16>, vector<8x8xbf16>, vector<8x8xf32> -> vector<8x8xf32>
    %61 = vector.extract_strided_slice %3 {offsets = [0, 24], sizes = [8, 8], strides = [1, 1]} : vector<16x96xf32> to vector<8x8xf32>
    %62 = vector.extract_strided_slice %3 {offsets = [0, 56], sizes = [8, 8], strides = [1, 1]} : vector<16x96xf32> to vector<8x8xf32>
    %63 = vector.extract_strided_slice %3 {offsets = [0, 88], sizes = [8, 8], strides = [1, 1]} : vector<16x96xf32> to vector<8x8xf32>
    %64 = arith.truncf %61 : vector<8x8xf32> to vector<8x8xbf16>
    %65 = arith.truncf %62 : vector<8x8xf32> to vector<8x8xbf16>
    %cst_15 = arith.constant dense<0.000000e+00> : vector<8x8xf32>
    %66 = tpu.matmul %64, %65, %cst_15 {dimension_numbers = #tpu.dot_dimension_numbers<[1], [1], [0], [0], [0, 0, 1, 0], [], []>} : vector<8x8xbf16>, vector<8x8xbf16>, vector<8x8xf32> -> vector<8x8xf32>
    %cst_16 = arith.constant dense<0xFF800000> : vector<8xf32>
    %67 = vector.multi_reduction <maximumf>, %66, %cst_16 [1] : vector<8x8xf32> to vector<8xf32>
    %68 = vector.shape_cast %67 : vector<8xf32> to vector<8x1xf32>
    %69 = vector.broadcast %68 : vector<8x1xf32> to vector<8x8xf32>
    %70 = arith.subf %66, %69 : vector<8x8xf32>
    %71 = math.exp %70 : vector<8x8xf32>
    %cst_17 = arith.constant dense<0.000000e+00> : vector<8xf32>
    %72 = vector.multi_reduction <add>, %71, %cst_17 [1] : vector<8x8xf32> to vector<8xf32>
    %73 = vector.shape_cast %72 : vector<8xf32> to vector<8x1xf32>
    %74 = tpu.reciprocal %73 {approx = true} : vector<8x1xf32> -> vector<8x1xf32>
    %75 = vector.broadcast %74 : vector<8x1xf32> to vector<8x8xf32>
    %76 = arith.mulf %71, %75 : vector<8x8xf32>
    %77 = arith.truncf %76 : vector<8x8xf32> to vector<8x8xbf16>
    %78 = arith.truncf %63 : vector<8x8xf32> to vector<8x8xbf16>
    %cst_18 = arith.constant dense<0.000000e+00> : vector<8x8xf32>
    %79 = tpu.matmul %77, %78, %cst_18 {dimension_numbers = #tpu.dot_dimension_numbers<[1], [0], [0], [1], [0, 0, 1, 1], [], []>} : vector<8x8xbf16>, vector<8x8xbf16>, vector<8x8xf32> -> vector<8x8xf32>
    %80 = tpu.concatenate %22, %41, %60, %79 in 1 : vector<8x8xf32>, vector<8x8xf32>, vector<8x8xf32>, vector<8x8xf32> -> vector<8x32xf32>
    %81 = vector.extract_strided_slice %3 {offsets = [8, 0], sizes = [8, 8], strides = [1, 1]} : vector<16x96xf32> to vector<8x8xf32>
    %82 = vector.extract_strided_slice %3 {offsets = [8, 32], sizes = [8, 8], strides = [1, 1]} : vector<16x96xf32> to vector<8x8xf32>
    %83 = vector.extract_strided_slice %3 {offsets = [8, 64], sizes = [8, 8], strides = [1, 1]} : vector<16x96xf32> to vector<8x8xf32>
    %84 = arith.truncf %81 : vector<8x8xf32> to vector<8x8xbf16>
    %85 = arith.truncf %82 : vector<8x8xf32> to vector<8x8xbf16>
    %cst_19 = arith.constant dense<0.000000e+00> : vector<8x8xf32>
    %86 = tpu.matmul %84, %85, %cst_19 {dimension_numbers = #tpu.dot_dimension_numbers<[1], [1], [0], [0], [0, 0, 1, 0], [], []>} : vector<8x8xbf16>, vector<8x8xbf16>, vector<8x8xf32> -> vector<8x8xf32>
    %cst_20 = arith.constant dense<0xFF800000> : vector<8xf32>
    %87 = vector.multi_reduction <maximumf>, %86, %cst_20 [1] : vector<8x8xf32> to vector<8xf32>
    %88 = vector.shape_cast %87 : vector<8xf32> to vector<8x1xf32>
    %89 = vector.broadcast %88 : vector<8x1xf32> to vector<8x8xf32>
    %90 = arith.subf %86, %89 : vector<8x8xf32>
    %91 = math.exp %90 : vector<8x8xf32>
    %cst_21 = arith.constant dense<0.000000e+00> : vector<8xf32>
    %92 = vector.multi_reduction <add>, %91, %cst_21 [1] : vector<8x8xf32> to vector<8xf32>
    %93 = vector.shape_cast %92 : vector<8xf32> to vector<8x1xf32>
    %94 = tpu.reciprocal %93 {approx = true} : vector<8x1xf32> -> vector<8x1xf32>
    %95 = vector.broadcast %94 : vector<8x1xf32> to vector<8x8xf32>
    %96 = arith.mulf %91, %95 : vector<8x8xf32>
    %97 = arith.truncf %96 : vector<8x8xf32> to vector<8x8xbf16>
    %98 = arith.truncf %83 : vector<8x8xf32> to vector<8x8xbf16>
    %cst_22 = arith.constant dense<0.000000e+00> : vector<8x8xf32>
    %99 = tpu.matmul %97, %98, %cst_22 {dimension_numbers = #tpu.dot_dimension_numbers<[1], [0], [0], [1], [0, 0, 1, 1], [], []>} : vector<8x8xbf16>, vector<8x8xbf16>, vector<8x8xf32> -> vector<8x8xf32>
    %100 = vector.extract_strided_slice %3 {offsets = [8, 8], sizes = [8, 8], strides = [1, 1]} : vector<16x96xf32> to vector<8x8xf32>
    %101 = vector.extract_strided_slice %3 {offsets = [8, 40], sizes = [8, 8], strides = [1, 1]} : vector<16x96xf32> to vector<8x8xf32>
    %102 = vector.extract_strided_slice %3 {offsets = [8, 72], sizes = [8, 8], strides = [1, 1]} : vector<16x96xf32> to vector<8x8xf32>
    %103 = arith.truncf %100 : vector<8x8xf32> to vector<8x8xbf16>
    %104 = arith.truncf %101 : vector<8x8xf32> to vector<8x8xbf16>
    %cst_23 = arith.constant dense<0.000000e+00> : vector<8x8xf32>
    %105 = tpu.matmul %103, %104, %cst_23 {dimension_numbers = #tpu.dot_dimension_numbers<[1], [1], [0], [0], [0, 0, 1, 0], [], []>} : vector<8x8xbf16>, vector<8x8xbf16>, vector<8x8xf32> -> vector<8x8xf32>
    %cst_24 = arith.constant dense<0xFF800000> : vector<8xf32>
    %106 = vector.multi_reduction <maximumf>, %105, %cst_24 [1] : vector<8x8xf32> to vector<8xf32>
    %107 = vector.shape_cast %106 : vector<8xf32> to vector<8x1xf32>
    %108 = vector.broadcast %107 : vector<8x1xf32> to vector<8x8xf32>
    %109 = arith.subf %105, %108 : vector<8x8xf32>
    %110 = math.exp %109 : vector<8x8xf32>
    %cst_25 = arith.constant dense<0.000000e+00> : vector<8xf32>
    %111 = vector.multi_reduction <add>, %110, %cst_25 [1] : vector<8x8xf32> to vector<8xf32>
    %112 = vector.shape_cast %111 : vector<8xf32> to vector<8x1xf32>
    %113 = tpu.reciprocal %112 {approx = true} : vector<8x1xf32> -> vector<8x1xf32>
    %114 = vector.broadcast %113 : vector<8x1xf32> to vector<8x8xf32>
    %115 = arith.mulf %110, %114 : vector<8x8xf32>
    %116 = arith.truncf %115 : vector<8x8xf32> to vector<8x8xbf16>
    %117 = arith.truncf %102 : vector<8x8xf32> to vector<8x8xbf16>
    %cst_26 = arith.constant dense<0.000000e+00> : vector<8x8xf32>
    %118 = tpu.matmul %116, %117, %cst_26 {dimension_numbers = #tpu.dot_dimension_numbers<[1], [0], [0], [1], [0, 0, 1, 1], [], []>} : vector<8x8xbf16>, vector<8x8xbf16>, vector<8x8xf32> -> vector<8x8xf32>
    %119 = vector.extract_strided_slice %3 {offsets = [8, 16], sizes = [8, 8], strides = [1, 1]} : vector<16x96xf32> to vector<8x8xf32>
    %120 = vector.extract_strided_slice %3 {offsets = [8, 48], sizes = [8, 8], strides = [1, 1]} : vector<16x96xf32> to vector<8x8xf32>
    %121 = vector.extract_strided_slice %3 {offsets = [8, 80], sizes = [8, 8], strides = [1, 1]} : vector<16x96xf32> to vector<8x8xf32>
    %122 = arith.truncf %119 : vector<8x8xf32> to vector<8x8xbf16>
    %123 = arith.truncf %120 : vector<8x8xf32> to vector<8x8xbf16>
    %cst_27 = arith.constant dense<0.000000e+00> : vector<8x8xf32>
    %124 = tpu.matmul %122, %123, %cst_27 {dimension_numbers = #tpu.dot_dimension_numbers<[1], [1], [0], [0], [0, 0, 1, 0], [], []>} : vector<8x8xbf16>, vector<8x8xbf16>, vector<8x8xf32> -> vector<8x8xf32>
    %cst_28 = arith.constant dense<0xFF800000> : vector<8xf32>
    %125 = vector.multi_reduction <maximumf>, %124, %cst_28 [1] : vector<8x8xf32> to vector<8xf32>
    %126 = vector.shape_cast %125 : vector<8xf32> to vector<8x1xf32>
    %127 = vector.broadcast %126 : vector<8x1xf32> to vector<8x8xf32>
    %128 = arith.subf %124, %127 : vector<8x8xf32>
    %129 = math.exp %128 : vector<8x8xf32>
    %cst_29 = arith.constant dense<0.000000e+00> : vector<8xf32>
    %130 = vector.multi_reduction <add>, %129, %cst_29 [1] : vector<8x8xf32> to vector<8xf32>
    %131 = vector.shape_cast %130 : vector<8xf32> to vector<8x1xf32>
    %132 = tpu.reciprocal %131 {approx = true} : vector<8x1xf32> -> vector<8x1xf32>
    %133 = vector.broadcast %132 : vector<8x1xf32> to vector<8x8xf32>
    %134 = arith.mulf %129, %133 : vector<8x8xf32>
    %135 = arith.truncf %134 : vector<8x8xf32> to vector<8x8xbf16>
    %136 = arith.truncf %121 : vector<8x8xf32> to vector<8x8xbf16>
    %cst_30 = arith.constant dense<0.000000e+00> : vector<8x8xf32>
    %137 = tpu.matmul %135, %136, %cst_30 {dimension_numbers = #tpu.dot_dimension_numbers<[1], [0], [0], [1], [0, 0, 1, 1], [], []>} : vector<8x8xbf16>, vector<8x8xbf16>, vector<8x8xf32> -> vector<8x8xf32>
    %138 = vector.extract_strided_slice %3 {offsets = [8, 24], sizes = [8, 8], strides = [1, 1]} : vector<16x96xf32> to vector<8x8xf32>
    %139 = vector.extract_strided_slice %3 {offsets = [8, 56], sizes = [8, 8], strides = [1, 1]} : vector<16x96xf32> to vector<8x8xf32>
    %140 = vector.extract_strided_slice %3 {offsets = [8, 88], sizes = [8, 8], strides = [1, 1]} : vector<16x96xf32> to vector<8x8xf32>
    %141 = arith.truncf %138 : vector<8x8xf32> to vector<8x8xbf16>
    %142 = arith.truncf %139 : vector<8x8xf32> to vector<8x8xbf16>
    %cst_31 = arith.constant dense<0.000000e+00> : vector<8x8xf32>
    %143 = tpu.matmul %141, %142, %cst_31 {dimension_numbers = #tpu.dot_dimension_numbers<[1], [1], [0], [0], [0, 0, 1, 0], [], []>} : vector<8x8xbf16>, vector<8x8xbf16>, vector<8x8xf32> -> vector<8x8xf32>
    %cst_32 = arith.constant dense<0xFF800000> : vector<8xf32>
    %144 = vector.multi_reduction <maximumf>, %143, %cst_32 [1] : vector<8x8xf32> to vector<8xf32>
    %145 = vector.shape_cast %144 : vector<8xf32> to vector<8x1xf32>
    %146 = vector.broadcast %145 : vector<8x1xf32> to vector<8x8xf32>
    %147 = arith.subf %143, %146 : vector<8x8xf32>
    %148 = math.exp %147 : vector<8x8xf32>
    %cst_33 = arith.constant dense<0.000000e+00> : vector<8xf32>
    %149 = vector.multi_reduction <add>, %148, %cst_33 [1] : vector<8x8xf32> to vector<8xf32>
    %150 = vector.shape_cast %149 : vector<8xf32> to vector<8x1xf32>
    %151 = tpu.reciprocal %150 {approx = true} : vector<8x1xf32> -> vector<8x1xf32>
    %152 = vector.broadcast %151 : vector<8x1xf32> to vector<8x8xf32>
    %153 = arith.mulf %148, %152 : vector<8x8xf32>
    %154 = arith.truncf %153 : vector<8x8xf32> to vector<8x8xbf16>
    %155 = arith.truncf %140 : vector<8x8xf32> to vector<8x8xbf16>
    %cst_34 = arith.constant dense<0.000000e+00> : vector<8x8xf32>
    %156 = tpu.matmul %154, %155, %cst_34 {dimension_numbers = #tpu.dot_dimension_numbers<[1], [0], [0], [1], [0, 0, 1, 1], [], []>} : vector<8x8xbf16>, vector<8x8xbf16>, vector<8x8xf32> -> vector<8x8xf32>
    %157 = tpu.concatenate %99, %118, %137, %156 in 1 : vector<8x8xf32>, vector<8x8xf32>, vector<8x8xf32>, vector<8x8xf32> -> vector<8x32xf32>
    %158 = tpu.concatenate %80, %157 in 0 : vector<8x32xf32>, vector<8x32xf32> -> vector<16x32xf32>
    %159 = arith.truncf %158 : vector<16x32xf32> to vector<16x32xbf16>
    %c0_35 = arith.constant 0 : index
    %c0_36 = arith.constant 0 : index
    %160 = vector.load %arg2[%c0_35, %c0_36] : memref<32x32xbf16, #tpu.memory_space<vmem>>, vector<32x32xbf16>
    %cst_37 = arith.constant dense<0.000000e+00> : vector<16x32xf32>
    %161 = tpu.matmul %159, %160, %cst_37 {dimension_numbers = #tpu.dot_dimension_numbers<[1], [0], [0], [1], [0, 0, 1, 1], [], []>} : vector<16x32xbf16>, vector<32x32xbf16>, vector<16x32xf32> -> vector<16x32xf32>
    %c0_38 = arith.constant 0 : index
    %c0_39 = arith.constant 0 : index
    %162 = vector.load %arg3[%c0_38, %c0_39] : memref<3x32xf32, #tpu.memory_space<vmem>>, vector<3x32xf32>
    %163 = vector.extract_strided_slice %162 {offsets = [0, 0], sizes = [1, 32], strides = [1, 1]} : vector<3x32xf32> to vector<1x32xf32>
    %164 = vector.extract_strided_slice %162 {offsets = [1, 0], sizes = [1, 32], strides = [1, 1]} : vector<3x32xf32> to vector<1x32xf32>
    %165 = vector.extract_strided_slice %162 {offsets = [2, 0], sizes = [1, 32], strides = [1, 1]} : vector<3x32xf32> to vector<1x32xf32>
    %166 = arith.addf %0, %161 : vector<16x32xf32>
    %167 = vector.broadcast %163 : vector<1x32xf32> to vector<16x32xf32>
    %168 = arith.addf %166, %167 : vector<16x32xf32>
    %cst_40 = arith.constant dense<0.000000e+00> : vector<16xf32>
    %169 = vector.multi_reduction <add>, %168, %cst_40 [1] : vector<16x32xf32> to vector<16xf32>
    %170 = vector.shape_cast %169 : vector<16xf32> to vector<16x1xf32>
    %cst_41 = arith.constant 3.200000e+01 : f32
    %171 = vector.broadcast %cst_41 : f32 to vector<16x1xf32>
    %172 = arith.divf %170, %171 : vector<16x1xf32>
    %173 = vector.broadcast %172 : vector<16x1xf32> to vector<16x32xf32>
    %174 = arith.subf %168, %173 : vector<16x32xf32>
    %175 = arith.mulf %174, %174 : vector<16x32xf32>
    %cst_42 = arith.constant dense<0.000000e+00> : vector<16xf32>
    %176 = vector.multi_reduction <add>, %175, %cst_42 [1] : vector<16x32xf32> to vector<16xf32>
    %177 = vector.shape_cast %176 : vector<16xf32> to vector<16x1xf32>
    %cst_43 = arith.constant 3.200000e+01 : f32
    %178 = vector.broadcast %cst_43 : f32 to vector<16x1xf32>
    %179 = arith.divf %177, %178 : vector<16x1xf32>
    %180 = vector.broadcast %172 : vector<16x1xf32> to vector<16x32xf32>
    %181 = arith.subf %168, %180 : vector<16x32xf32>
    %cst_44 = arith.constant 9.99999974E-6 : f32
    %182 = vector.broadcast %cst_44 : f32 to vector<16x1xf32>
    %183 = arith.addf %179, %182 : vector<16x1xf32>
    %184 = math.rsqrt %183 : vector<16x1xf32>
    %185 = vector.broadcast %184 : vector<16x1xf32> to vector<16x32xf32>
    %186 = arith.mulf %181, %185 : vector<16x32xf32>
    %187 = vector.broadcast %164 : vector<1x32xf32> to vector<16x32xf32>
    %188 = arith.mulf %186, %187 : vector<16x32xf32>
    %189 = vector.broadcast %165 : vector<1x32xf32> to vector<16x32xf32>
    %190 = arith.addf %188, %189 : vector<16x32xf32>
    %c0_45 = arith.constant 0 : index
    %c0_46 = arith.constant 0 : index
    %191 = vector.load %arg4[%c0_45, %c0_46] : memref<16x32xf32, #tpu.memory_space<vmem>>, vector<16x32xf32>
    tpu.vector_store %arg4[%c0_45, %c0_46], %190 {strides = array<i32>} : memref<16x32xf32, #tpu.memory_space<vmem>>, vector<16x32xf32>,
    return
  }
}

</mosaic_0001>

<bundles_post_ra>
// kernel: encoder_layer.1
= control target key start
LH: loop header
LB: loop body
LE: loop exit
PB: predicated region body
PF: predicated region fallthrough
CT: control target
= control target key end

     0   :  { %9 = vsyncpa [#allocation3], 0  ;;  %s1773_s0 = inlined_call_operand.hbm [shape: f32[16,32], index: 0, kind: input, shape index: {}]   ;;  %s1774_s1 = inlined_call_operand.hbm [shape: bf16[32,96], index: 1, kind: input, shape index: {}]   ;;  %s1775_s2 = inlined_call_operand.hbm [shape: bf16[32,32], index: 2, kind: input, shape index: {}]   ;;  %s1776_s3 = inlined_call_operand.vmem [shape: f32[3,32], index: 3, kind: input, shape index: {}]   ;;  %s1777_s4 = inlined_call_operand.hbm [shape: f32[16,32], index: 4, kind: output, shape index: {}]  }
   0x1   :  { %10 = vsyncpa [#allocation6], 0 }
   0x2   :  { %11 = vsyncpa [#allocation4], 0  ;;  %s1502_s15 = smov [#allocation5]  }
   0x3   :  { %s29_s16 = sshll.u32 %s1502_s15, 4  ;;  %s30_s16 = int_to_ptr.vmem [resolvable:$true] %s29_s16 }
   0x4   :  { %s1424_s17 = scalar_lea.vmem %s30_s16, 256  ;;  %p1429_p1 = scmp.lt.s32.totalorder %s30_s16, %s30_s16 }
   0x5   :  { %p1425_p0 = scmp.ne.s32.totalorder %s30_s16, %s1424_s17  ;;  %p1430_p2 = scmp.lt.s32.totalorder %s1424_s17, %s1424_s17 }
   0x7   :  { %p1431_p3 = por %p1430_p2, %p1429_p1 }
   0x9   :  { %p1432_p4 = pnand %p1431_p3, %p1425_p0 }
   0xb   :  { %1435 = shalt.err (!%p1432_p4)
}
   0xc   :  { %s1503_s18 = smov 64   ;;  %s1504_s19 = smov 4  }
   0xd   :  { %35 = dma.hbm_to_vmem [thread:$0]  %s1774_s1, 256, %s30_s16, [#allocation6], %s1503_s18, %s1503_s18, %s1504_s19  }
   0xe   :  { %s1505_s22 = smov [#allocation2]  }
   0xf   :  { %s17_s23 = sshll.u32 %s1505_s22, 4  ;;  %s18_s23 = int_to_ptr.vmem [resolvable:$true] %s17_s23 }
  0x10   :  { %s1444_s24 = scalar_lea.vmem %s18_s23, 256  ;;  %p1449_p6 = scmp.lt.s32.totalorder %s18_s23, %s18_s23 }
  0x11   :  { %p1445_p5 = scmp.ne.s32.totalorder %s18_s23, %s1444_s24  ;;  %p1450_p7 = scmp.lt.s32.totalorder %s1444_s24, %s1444_s24 }
  0x13   :  { %p1451_p8 = por %p1450_p7, %p1449_p6 }
  0x15   :  { %p1452_p9 = pnand %p1451_p8, %p1445_p5 }
  0x17   :  { %1455 = shalt.err (!%p1452_p9)
}
  0x18   :  { %s1506_s25 = smov 128   ;;  %s1507_s26 = smov 8  }
  0x19   :  { %23 = dma.hbm_to_vmem [thread:$0]  %s1773_s0, 256, %s18_s23, [#allocation3], %s1506_s25, %s1506_s25, %s1507_s26  }
  0x1a   :  { %s1508_s1 = smov [#allocation7]  }
  0x1b   :  { %s41_s29 = sshll.u32 %s1508_s1, 4  ;;  %s42_s29 = int_to_ptr.vmem [resolvable:$true] %s41_s29 }
  0x1c   :  { %s1464_s30 = scalar_lea.vmem %s42_s29, 256  ;;  %p1469_p11 = scmp.lt.s32.totalorder %s42_s29, %s42_s29 }
  0x1d   :  { %p1465_p10 = scmp.ne.s32.totalorder %s42_s29, %s1464_s30  ;;  %p1470_p12 = scmp.lt.s32.totalorder %s1464_s30, %s1464_s30 }
  0x1f   :  { %p1471_p13 = por %p1470_p12, %p1469_p11 }
  0x21   :  { %p1472_p0 = pnand %p1471_p13, %p1465_p10 }
  0x23   :  { %1475 = shalt.err (!%p1472_p0)
}
  0x24   :  { %47 = dma.hbm_to_vmem [thread:$0]  %s1775_s2, 256, %s42_s29, [#allocation6], %s1503_s18, %s1503_s18, %s1504_s19  }
  0x25   :  { %1496 = dma.done.wait [#allocation3], 256  }
  0x26   :  { %1497 = vsyncadd [#allocation3], 4294967040 }
  0x27   :  { %1498 = dma.done.wait [#allocation6], 512  }
  0x28   :  { %1499 = vsyncadd [#allocation6], 4294966784  ;;  %v1509_v0 = vmov 0.0   ;;  %vm1510_vm0 = vmmov 0   ;;  %v1376_v1 = vld [vmem:[#allocation5 + $0x8] sm:$0xff]   ;;  %v1377_v2 = vld [vmem:[#allocation5] sm:$0xff]  }
  0x29   :  { %1227 = vmatprep.subr.bf16.mxu0 %v1509_v0  ;;  %1231 = vmatprep.mubr.msk.bf16.mxu0 %vm1510_vm0, %v1509_v0  ;;  %v1571_v3 = vld [vmem:[#allocation2] sm:$0xff]  ;;  %v1573_v4 = vld [vmem:[#allocation2 + $0x8] sm:$0xff]  ;;  %vm79_vm1 = vcmask 261120   ;;  %s1511_s0 = smov 120   ;;  %s1512_s2 = smov 96   ;;  %vm128_vm2 = vcmask 64512  }
  0x2a   :  { %1235 = vmatprep.subr.bf16.mxu1 %v1509_v0  ;;  %1237 = vmatprep.mubr.msk.bf16.mxu1 %vm1510_vm0, %v1509_v0  ;;  %v62_v5 = vpack.c.bf16 %v1573_v4, %v1571_v3  ;;  %s1513_s7 = smov 80   ;;  %s1514_s8 = smov 88   ;;  %vm192_vm3 = vcmask 1043456   ;;  %vm579_vm4 = vcmask 130048   ;;  %vm581_vm5 = vcmask 195584  }
  0x2b   :  { %1228 = vmatpush3.bf16.msra.mxu0 %v1376_v1  ;;  %s1515_s9 = smov 72   ;;  %s1516_s10 = smov 112  }
  0x2c   :  { %1229 = vmatprep.subr.bf16.mxu0 %v1509_v0  ;;  %s1517_s11 = smov 104   ;;  %s1518_s12 = smov 56  }
  0x2d   :  { %s1519_s13 = smov 48   ;;  %s1520_s14 = smov 40  }
  0x2e   :  { %s1521_s15 = smov 16   ;;  %s1522_s16 = smov 24  }
  0x2f   :  { %1230 = vmatpush3.bf16.msra.mxu0 %v1377_v2 }
  0x30   :  { %1241 = vmatprep.subr.bf16.mxu0 %v1509_v0 }
  0x32   :  { %1232 = vmatmul.mubr.msk.bf16.vlgmr.msra.gmra.mxu0 %vm79_vm1, %v62_v5 }
  0x33   :  { %1243 = vmatprep.mubr.msk.bf16.mxu0 %vm1510_vm0, %v1509_v0 }
  0xf2   :  { %v117_v6 = vpop.f32.mrf.mxu0 }
  0xf3   :  { %v1582_v7 = vpack.c.bf16 %v117_v6, %v117_v6 }
  0xf4   :  { %v1233_v8 = vpop.f32.mrf.mxu0 }
  0xf5   :  { %236 = vrot.lane.b32.xlu1 %v1582_v7, %s1511_s0  ;;  %126 = vrot.lane.b32.xlu0 %v1582_v7, %s1512_s2 }
  0xf6   :  { %v120_v9 = vpop.f32.mrf.mxu0 }
  0xf7   :  { %v1590_v11 = vpack.c.bf16 %v120_v9, %v120_v9 }
  0xf8   :  { %v1234_v10 = vpop.f32.mrf.mxu0 }
  0xf9   :  { %348 = vrot.lane.b32.xlu1 %v1582_v7, %s1513_s7  ;;  %238 = vrot.lane.b32.xlu0 %v1582_v7, %s1514_s8 }
  0xfd   :  { %458 = vrot.lane.b32.xlu1 %v1582_v7, %s1515_s9  ;;  %346 = vrot.lane.b32.xlu0 %v1582_v7, %s1516_s10 }
 0x101   :  { %456 = vrot.lane.b32.xlu0 %v1582_v7, %s1517_s11  ;;  %585 = vrot.lane.b32.xlu1 %v1590_v11, %s1512_s2 }
 0x105   :  { %695 = vrot.lane.b32.xlu0 %v1590_v11, %s1514_s8  ;;  %693 = vrot.lane.b32.xlu1 %v1590_v11, %s1511_s0 }
 0x109   :  { %805 = vrot.lane.b32.xlu0 %v1590_v11, %s1513_s7  ;;  %803 = vrot.lane.b32.xlu1 %v1590_v11, %s1516_s10 }
 0x10d   :  { %915 = vrot.lane.b32.xlu0 %v1590_v11, %s1515_s9  ;;  %913 = vrot.lane.b32.xlu1 %v1590_v11, %s1517_s11 }
 0x167   :  { %v127_v12 = vpop.permute.xlu0 %126  ;;  %v237_v15 = vpop.permute.xlu1 %236 }
 0x168   :  { %v133_v13 = vsel %vm128_vm2, %v127_v12, 0 }
 0x169   :  { %1236 = vmatpush3.bf16.xpose.msra.mxu1 %v133_v13 }
 0x16a   :  { %1247 = vmatprep.subr.bf16.mxu1 %v1509_v0 }
 0x16b   :  { %v239_v14 = vpop.permute.xlu0 %238  ;;  %v349_v17 = vpop.permute.xlu1 %348 }
 0x16c   :  { %v244_v16 = vsel %vm128_vm2, %v239_v14, 0  ;;  %v354_v18 = vsel %vm128_vm2, %v349_v17, 0 }
 0x16f   :  { %v459_v19 = vpop.permute.xlu1 %458  ;;  %v347_v20 = vpop.permute.xlu0 %346 }
 0x170   :  { %1238 = vmatmul.mubr.msk.bf16.vlgmr.msra.gmra.mxu1 %vm128_vm2, %v1582_v7  ;;  %v464_v21 = vsel %vm128_vm2, %v459_v19, 0 }
 0x171   :  { %1248 = vmatpush3.bf16.xpose.msra.mxu1 %v244_v16  ;;  %1249 = vmatprep.mubr.msk.bf16.mxu1 %vm1510_vm0, %v1509_v0 }
 0x172   :  { %1259 = vmatprep.subr.bf16.mxu1 %v1509_v0 }
 0x173   :  { %v586_v22 = vpop.permute.xlu1 %585  ;;  %v457_v23 = vpop.permute.xlu0 %456 }
 0x174   :  { %v591_v24 = vsel %vm128_vm2, %v586_v22, 0 }
 0x177   :  { %v696_v25 = vpop.permute.xlu0 %695  ;;  %v694_v28 = vpop.permute.xlu1 %693 }
 0x178   :  { %1250 = vmatmul.mubr.msk.bf16.vlgmr.msra.gmra.mxu1 %vm128_vm2, %v237_v15  ;;  %v701_v26 = vsel %vm128_vm2, %v696_v25, 0 }
 0x179   :  { %1260 = vmatpush3.bf16.xpose.msra.mxu1 %v354_v18  ;;  %1261 = vmatprep.mubr.msk.bf16.mxu1 %vm1510_vm0, %v1509_v0 }
 0x17a   :  { %1271 = vmatprep.subr.bf16.mxu1 %v1509_v0 }
 0x17b   :  { %v806_v27 = vpop.permute.xlu0 %805  ;;  %v804_v31 = vpop.permute.xlu1 %803 }
 0x17c   :  { %v811_v29 = vsel %vm128_vm2, %v806_v27, 0 }
 0x17f   :  { %v916_v30 = vpop.permute.xlu0 %915  ;;  %v914_v33 = vpop.permute.xlu1 %913 }
 0x180   :  { %1262 = vmatmul.mubr.msk.bf16.vlgmr.msra.gmra.mxu1 %vm128_vm2, %v347_v20  ;;  %v921_v32 = vsel %vm128_vm2, %v916_v30, 0 }
 0x181   :  { %1272 = vmatpush3.bf16.xpose.msra.mxu1 %v464_v21  ;;  %1273 = vmatprep.mubr.msk.bf16.mxu1 %vm1510_vm0, %v1509_v0 }
 0x182   :  { %1283 = vmatprep.subr.bf16.mxu1 %v1509_v0 }
 0x188   :  { %1274 = vmatmul.mubr.msk.bf16.vlgmr.msra.gmra.mxu1 %vm128_vm2, %v457_v23 }
 0x189   :  { %1284 = vmatpush3.bf16.xpose.msra.mxu1 %v591_v24  ;;  %1285 = vmatprep.mubr.msk.bf16.mxu1 %vm1510_vm0, %v1509_v0 }
 0x18a   :  { %1295 = vmatprep.subr.bf16.mxu1 %v1509_v0 }
 0x190   :  { %1286 = vmatmul.mubr.msk.bf16.vlgmr.msra.gmra.mxu1 %vm128_vm2, %v1590_v11 }
 0x191   :  { %1296 = vmatpush3.bf16.xpose.msra.mxu1 %v701_v26  ;;  %1297 = vmatprep.mubr.msk.bf16.mxu1 %vm1510_vm0, %v1509_v0 }
 0x192   :  { %1307 = vmatprep.subr.bf16.mxu1 %v1509_v0 }
 0x198   :  { %1298 = vmatmul.mubr.msk.bf16.vlgmr.msra.gmra.mxu1 %vm128_vm2, %v694_v28 }
 0x199   :  { %1308 = vmatpush3.bf16.xpose.msra.mxu1 %v811_v29  ;;  %1309 = vmatprep.mubr.msk.bf16.mxu1 %vm1510_vm0, %v1509_v0 }
 0x19a   :  { %1319 = vmatprep.subr.bf16.mxu1 %v1509_v0 }
 0x1a0   :  { %1310 = vmatmul.mubr.msk.bf16.vlgmr.msra.gmra.mxu1 %vm128_vm2, %v804_v31 }
 0x1a1   :  { %1320 = vmatpush3.bf16.xpose.msra.mxu1 %v921_v32  ;;  %1321 = vmatprep.mubr.msk.bf16.mxu1 %vm1510_vm0, %v1509_v0 }
 0x1a2   :  { %1331 = vmatprep.subr.bf16.mxu1 %v1509_v0 }
 0x1a8   :  { %1322 = vmatmul.mubr.msk.bf16.vlgmr.msra.gmra.mxu1 %vm128_vm2, %v914_v33 }
 0x1a9   :  { %1335 = vmatprep.mubr.msk.bf16.mxu1 %vm1510_vm0, %v1509_v0 }
 0x230   :  { %v169_v34 = vpop.f32.mrf.mxu1 }
 0x231   :  { %v175_v35 = vsel %vm128_vm2, %v169_v34, -inf }
 0x232   :  { %v1239_v36 = vpop.f32.mrf.mxu1  ;;  %176 = vmax.xlane.f32.xlu0 %v175_v35 }
 0x234   :  { %v172_v37 = vpop.f32.mrf.mxu1 }
 0x236   :  { %v1240_v38 = vpop.f32.mrf.mxu1 }
 0x238   :  { %v280_v39 = vpop.f32.mrf.mxu1 }
 0x239   :  { %v286_v40 = vsel %vm128_vm2, %v280_v39, -inf }
 0x23a   :  { %v1251_v41 = vpop.f32.mrf.mxu1  ;;  %287 = vmax.xlane.f32.xlu1 %v286_v40 }
 0x23c   :  { %v283_v42 = vpop.f32.mrf.mxu1 }
 0x23e   :  { %v1252_v43 = vpop.f32.mrf.mxu1 }
 0x240   :  { %v390_v44 = vpop.f32.mrf.mxu1 }
 0x241   :  { %v396_v45 = vsel %vm128_vm2, %v390_v44, -inf }
 0x242   :  { %v1263_v46 = vpop.f32.mrf.mxu1  ;;  %397 = vmax.xlane.f32.xlu0 %v396_v45 }
 0x244   :  { %v393_v47 = vpop.f32.mrf.mxu1 }
 0x246   :  { %v1264_v48 = vpop.f32.mrf.mxu1 }
 0x248   :  { %v1645_v49 = vpop.f32.mrf.mxu1 }
 0x249   :  { %v506_v50 = vsel %vm128_vm2, %v1645_v49, -inf }
 0x24a   :  { %v1275_v51 = vpop.f32.mrf.mxu1  ;;  %507 = vmax.xlane.f32.xlu0 %v506_v50 }
 0x24c   :  { %v503_v52 = vpop.f32.mrf.mxu1 }
 0x24e   :  { %v1276_v53 = vpop.f32.mrf.mxu1 }
 0x250   :  { %v1649_v54 = vpop.f32.mrf.mxu1 }
 0x251   :  { %v633_v55 = vsel %vm128_vm2, %v1649_v54, -inf }
 0x252   :  { %634 = vmax.xlane.f32.xlu1 %v633_v55  ;;  %v1287_v56 = vpop.f32.mrf.mxu1 }
 0x254   :  { %v630_v57 = vpop.f32.mrf.mxu1 }
 0x256   :  { %v1288_v58 = vpop.f32.mrf.mxu1 }
 0x258   :  { %v737_v59 = vpop.f32.mrf.mxu1 }
 0x259   :  { %v743_v60 = vsel %vm128_vm2, %v737_v59, -inf }
 0x25a   :  { %744 = vmax.xlane.f32.xlu0 %v743_v60  ;;  %v1299_v61 = vpop.f32.mrf.mxu1 }
 0x25c   :  { %v740_v62 = vpop.f32.mrf.mxu1 }
 0x25e   :  { %v1300_v63 = vpop.f32.mrf.mxu1 }
 0x260   :  { %v847_v1 = vpop.f32.mrf.mxu1 }
 0x261   :  { %v853_v2 = vsel %vm128_vm2, %v847_v1, -inf }
 0x262   :  { %854 = vmax.xlane.f32.xlu1 %v853_v2  ;;  %v1311_v5 = vpop.f32.mrf.mxu1 }
 0x264   :  { %v850_v6 = vpop.f32.mrf.mxu1 }
 0x266   :  { %v1312_v8 = vpop.f32.mrf.mxu1 }
 0x268   :  { %v1655_v9 = vpop.f32.mrf.mxu1 }
 0x269   :  { %v963_v14 = vsel %vm128_vm2, %v1655_v9, -inf }
 0x26a   :  { %v1323_v10 = vpop.f32.mrf.mxu1 }
 0x26c   :  { %v960_v12 = vpop.f32.mrf.mxu1 }
 0x26e   :  { %v1324_v13 = vpop.f32.mrf.mxu1 }
 0x270   :  { %298 = vrot.lane.b32.xlu0 %v1582_v7, %s1518_s12 }
 0x273   :  { %187 = vrot.lane.b32.xlu1 %v1582_v7, %s1503_s18 }
 0x28f   :  { %964 = vmax.xlane.f32.xlu0 %v963_v14 }
 0x2bb   :  { %v177_v15 = vpop.xlane.xlu0 %176 }
 0x2bc   :  { %v178_v16 = vsub.f32 %v169_v34, %v177_v15 }
 0x2be   :  { %v179_v17 = vmul.f32 1.442695, %v178_v16 }
 0x2c0   :  { %1380 = vpow2.f32 %v179_v17 }
 0x2c3   :  { %v288_v18 = vpop.xlane.xlu1 %287 }
 0x2c4   :  { %v289_v19 = vsub.f32 %v280_v39, %v288_v18 }
 0x2c6   :  { %v290_v20 = vmul.f32 1.442695, %v289_v19 }
 0x2c8   :  { %1382 = vpow2.f32 %v290_v20 }
 0x2cb   :  { %v398_v21 = vpop.xlane.xlu0 %397 }
 0x2cc   :  { %v399_v22 = vsub.f32 %v390_v44, %v398_v21 }
 0x2cd   :  { %v1663_v23 = vpop.eup %1380 }
 0x2ce   :  { %v400_v24 = vmul.f32 1.442695, %v399_v22  ;;  %v181_v25 = vsel %vm128_vm2, %v1663_v23, 0.0 }
 0x2cf   :  { %182 = vadd.xlane.f32.xlu1 %v181_v25 }
 0x2d0   :  { %1384 = vpow2.f32 %v400_v24 }
 0x2d3   :  { %v508_v33 = vpop.xlane.xlu0 %507 }
 0x2d4   :  { %v509_v35 = vsub.f32 %v1645_v49, %v508_v33 }
 0x2d5   :  { %v1667_v26 = vpop.eup %1382 }
 0x2d6   :  { %v292_v27 = vsel %vm128_vm2, %v1667_v26, 0.0  ;;  %v510_v36 = vmul.f32 1.442695, %v509_v35 }
 0x2d7   :  { %293 = vadd.xlane.f32.xlu0 %v292_v27 }
 0x2d8   :  { %1386 = vpow2.f32 %v510_v36 }
 0x2db   :  { %v635_v30 = vpop.xlane.xlu1 %634 }
 0x2dc   :  { %v636_v37 = vsub.f32 %v1649_v54, %v635_v30 }
 0x2dd   :  { %v1671_v28 = vpop.eup %1384 }
 0x2de   :  { %v402_v29 = vsel %vm128_vm2, %v1671_v28, 0.0  ;;  %v637_v40 = vmul.f32 1.442695, %v636_v37 }
 0x2df   :  { %403 = vadd.xlane.f32.xlu1 %v402_v29 }
 0x2e0   :  { %1388 = vpow2.f32 %v637_v40 }
 0x2e3   :  { %v745_v38 = vpop.xlane.xlu0 %744 }
 0x2e4   :  { %v746_v39 = vsub.f32 %v737_v59, %v745_v38 }
 0x2e5   :  { %v1387_v44 = vpop.eup %1386 }
 0x2e6   :  { %v747_v42 = vmul.f32 1.442695, %v746_v39 }
 0x2e7   :  { %v299_v51 = vpop.permute.xlu0 %298 }
 0x2e8   :  { %1390 = vpow2.f32 %v747_v42  ;;  %v304_v63 = vsel %vm192_vm3, %v299_v51, 0 }
 0x2eb   :  { %v855_v31 = vpop.xlane.xlu1 %854 }
 0x2ec   :  { %v856_v41 = vsub.f32 %v847_v1, %v855_v31 }
 0x2ed   :  { %408 = vrot.lane.b32.xlu0 %v1582_v7, %s1519_s13  ;;  %v1684_v45 = vpop.eup %1388 }
 0x2ee   :  { %v857_v43 = vmul.f32 1.442695, %v856_v41  ;;  %v639_v47 = vsel %vm128_vm2, %v1684_v45, 0.0 }
 0x2ef   :  { %v188_v32 = vpop.permute.xlu1 %187 }
 0x2f0   :  { %v194_v34 = vsel %vm192_vm3, %v188_v32, 0  ;;  %518 = vrot.lane.b32.xlu1 %v1582_v7, %s1520_s14  ;;  %1392 = vpow2.f32 %v857_v43  ;;  %v512_v7 = vsel %vm128_vm2, %v1387_v44, 0.0 }
 0x2f1   :  { %1242 = vmatpush3.bf16.msra.mxu0 %v194_v34 }
 0x2f2   :  { %1253 = vmatprep.subr.bf16.mxu0 %v1509_v0 }
 0x2f5   :  { %v1686_v46 = vpop.eup %1390 }
 0x2f6   :  { %v749_v49 = vsel %vm128_vm2, %v1686_v46, 0.0 }
 0x2fd   :  { %v1690_v48 = vpop.eup %1392 }
 0x2fe   :  { %v859_v50 = vsel %vm128_vm2, %v1690_v48, 0.0 }
 0x30c   :  { %513 = vadd.xlane.f32.xlu0 %v512_v7 }
 0x310   :  { %640 = vadd.xlane.f32.xlu0 %v639_v47 }
 0x314   :  { %750 = vadd.xlane.f32.xlu1 %v749_v49  ;;  %860 = vadd.xlane.f32.xlu0 %v859_v50 }
 0x318   :  { %v965_v52 = vpop.xlane.xlu0 %964 }
 0x319   :  { %v966_v53 = vsub.f32 %v1655_v9, %v965_v52 }
 0x31b   :  { %v967_v54 = vmul.f32 1.442695, %v966_v53 }
 0x31d   :  { %1394 = vpow2.f32 %v967_v54 }
 0x325   :  { %755 = vrot.lane.b32.xlu1 %v1590_v11, %s1518_s12 }
 0x329   :  { %865 = vrot.lane.b32.xlu1 %v1590_v11, %s1519_s13 }
 0x32a   :  { %v1701_v55 = vpop.eup %1394 }
 0x32b   :  { %v969_v56 = vsel %vm128_vm2, %v1701_v55, 0.0 }
 0x32c   :  { %970 = vadd.xlane.f32.xlu0 %v969_v56 }
 0x32d   :  { %975 = vrot.lane.b32.xlu1 %v1590_v11, %s1520_s14 }
 0x342   :  { %645 = vrot.lane.b32.xlu0 %v1590_v11, %s1503_s18 }
 0x358   :  { %v183_v57 = vpop.xlane.xlu1 %182 }
 0x359   :  { %1396 = vrcp.f32 %v183_v57 }
 0x360   :  { %v294_v58 = vpop.xlane.xlu0 %293 }
 0x361   :  { %1398 = vrcp.f32 %v294_v58 }
 0x364   :  { %v409_v2 = vpop.permute.xlu0 %408 }
 0x365   :  { %v414_v6 = vsel %vm192_vm3, %v409_v2, 0 }
 0x366   :  { %v1397_v59 = vpop.eup %1396 }
 0x367   :  { %v185_v60 = vmul.f32 %v1397_v59, %v1663_v23 }
 0x368   :  { %v404_v61 = vpop.xlane.xlu1 %403 }
 0x369   :  { %1400 = vrcp.f32 %v404_v61  ;;  %v186_v62 = vpack.c.bf16 %v185_v60, %v185_v60 }
 0x36b   :  { %1244 = vmatmul.mubr.msk.bf16.vlgmr.msra.gmra.mxu0 %vm128_vm2, %v186_v62  ;;  %v1378_v62 = vld [vmem:[#allocation7 + $0x8] sm:$0xff]  }
 0x36c   :  { %1254 = vmatpush3.bf16.msra.mxu0 %v304_v63  ;;  %1255 = vmatprep.mubr.msk.bf16.mxu0 %vm1510_vm0, %v1509_v0  ;;  %v519_v10 = vpop.permute.xlu1 %518 }
 0x36d   :  { %1265 = vmatprep.subr.bf16.mxu0 %v1509_v0  ;;  %v524_v13 = vsel %vm192_vm3, %v519_v10, 0  ;;  %1332 = vmatpush3.bf16.msra.mxu1 %v1378_v62 }
 0x36e   :  { %v1399_v11 = vpop.eup %1398  ;;  %1333 = vmatprep.subr.bf16.mxu1 %v1509_v0 }
 0x36f   :  { %v296_v1 = vmul.f32 %v1399_v11, %v1667_v26 }
 0x371   :  { %v297_v5 = vpack.c.bf16 %v296_v1, %v296_v1 }
 0x373   :  { %1256 = vmatmul.mubr.msk.bf16.vlgmr.msra.gmra.mxu0 %vm128_vm2, %v297_v5  ;;  %v1379_v5 = vld [vmem:[#allocation7] sm:$0xff]  }
 0x374   :  { %1266 = vmatpush3.bf16.msra.mxu0 %v414_v6  ;;  %1267 = vmatprep.mubr.msk.bf16.mxu0 %vm1510_vm0, %v1509_v0 }
 0x375   :  { %1277 = vmatprep.subr.bf16.mxu0 %v1509_v0  ;;  %1334 = vmatpush3.bf16.msra.mxu1 %v1379_v5 }
 0x376   :  { %v1401_v8 = vpop.eup %1400 }
 0x377   :  { %v406_v9 = vmul.f32 %v1401_v8, %v1671_v28 }
 0x379   :  { %v407_v12 = vpack.c.bf16 %v406_v9, %v406_v9 }
 0x37b   :  { %1268 = vmatmul.mubr.msk.bf16.vlgmr.msra.gmra.mxu0 %vm128_vm2, %v407_v12 }
 0x37c   :  { %1278 = vmatpush3.bf16.msra.mxu0 %v524_v13  ;;  %1279 = vmatprep.mubr.msk.bf16.mxu0 %vm1510_vm0, %v1509_v0 }
 0x37d   :  { %1289 = vmatprep.subr.bf16.mxu0 %v1509_v0 }
 0x395   :  { %v514_v14 = vpop.xlane.xlu0 %513 }
 0x396   :  { %1402 = vrcp.f32 %v514_v14 }
 0x399   :  { %v641_v17 = vpop.xlane.xlu0 %640 }
 0x39a   :  { %1404 = vrcp.f32 %v641_v17 }
 0x39d   :  { %v751_v19 = vpop.xlane.xlu1 %750  ;;  %v861_v20 = vpop.xlane.xlu0 %860 }
 0x39e   :  { %1406 = vrcp.f32 %v751_v19 }
 0x39f   :  { %1408 = vrcp.f32 %v861_v20 }
 0x3a1   :  { %v756_v26 = vpop.permute.xlu1 %755 }
 0x3a2   :  { %v761_v29 = vsel %vm192_vm3, %v756_v26, 0 }
 0x3a3   :  { %v1403_v15 = vpop.eup %1402 }
 0x3a4   :  { %v516_v16 = vmul.f32 %v1403_v15, %v1387_v44 }
 0x3a5   :  { %v866_v31 = vpop.permute.xlu1 %865 }
 0x3a6   :  { %v517_v18 = vpack.c.bf16 %v516_v16, %v516_v16  ;;  %v871_v34 = vsel %vm192_vm3, %v866_v31, 0 }
 0x3a7   :  { %v1405_v21 = vpop.eup %1404 }
 0x3a8   :  { %1280 = vmatmul.mubr.msk.bf16.vlgmr.msra.gmra.mxu0 %vm128_vm2, %v517_v18  ;;  %v643_v23 = vmul.f32 %v1405_v21, %v1684_v45 }
 0x3a9   :  { %1291 = vmatprep.mubr.msk.bf16.mxu0 %vm1510_vm0, %v1509_v0  ;;  %v976_v36 = vpop.permute.xlu1 %975 }
 0x3aa   :  { %v644_v27 = vpack.c.bf16 %v643_v23, %v643_v23  ;;  %v981_v39 = vsel %vm192_vm3, %v976_v36, 0 }
 0x3ab   :  { %v1407_v28 = vpop.eup %1406 }
 0x3ac   :  { %v753_v30 = vmul.f32 %v1407_v28, %v1686_v46  ;;  %v1409_v33 = vpop.eup %1408 }
 0x3ad   :  { %v863_v35 = vmul.f32 %v1409_v33, %v1690_v48  ;;  %v1102_v33 = vlaneseq }
 0x3ae   :  { %v754_v32 = vpack.c.bf16 %v753_v30, %v753_v30 }
 0x3af   :  { %v864_v37 = vpack.c.bf16 %v863_v35, %v863_v35 }
 0x3b5   :  { %v971_v22 = vpop.xlane.xlu0 %970 }
 0x3b6   :  { %1410 = vrcp.f32 %v971_v22 }
 0x3b9   :  { %v646_v24 = vpop.permute.xlu0 %645 }
 0x3ba   :  { %v651_v25 = vsel %vm192_vm3, %v646_v24, 0 }
 0x3bb   :  { %1290 = vmatpush3.bf16.msra.mxu0 %v651_v25 }
 0x3bc   :  { %1301 = vmatprep.subr.bf16.mxu0 %v1509_v0 }
 0x3be   :  { %1292 = vmatmul.mubr.msk.bf16.vlgmr.msra.gmra.mxu0 %vm128_vm2, %v644_v27 }
 0x3bf   :  { %1302 = vmatpush3.bf16.msra.mxu0 %v761_v29  ;;  %1303 = vmatprep.mubr.msk.bf16.mxu0 %vm1510_vm0, %v1509_v0 }
 0x3c0   :  { %1313 = vmatprep.subr.bf16.mxu0 %v1509_v0 }
 0x3c3   :  { %v1411_v38 = vpop.eup %1410 }
 0x3c4   :  { %v973_v40 = vmul.f32 %v1411_v38, %v1701_v55 }
 0x3c6   :  { %1304 = vmatmul.mubr.msk.bf16.vlgmr.msra.gmra.mxu0 %vm128_vm2, %v754_v32  ;;  %v974_v41 = vpack.c.bf16 %v973_v40, %v973_v40 }
 0x3c7   :  { %1314 = vmatpush3.bf16.msra.mxu0 %v871_v34  ;;  %1315 = vmatprep.mubr.msk.bf16.mxu0 %vm1510_vm0, %v1509_v0  ;;  %v1103_v34 = vshrl.u32 %v1102_v33, 7 }
 0x3c8   :  { %1325 = vmatprep.subr.bf16.mxu0 %v1509_v0 }
 0x3c9   :  { %v1137_v35 = vsub.s32 1, %v1103_v34  ;;  %v1143_v36 = vsub.s32 2, %v1103_v34  ;;  %v1104_v40 = vsub.s32 0, %v1103_v34 }
 0x3ce   :  { %1316 = vmatmul.mubr.msk.bf16.vlgmr.msra.gmra.mxu0 %vm128_vm2, %v864_v37  ;;  %v1099_v37 = vld [vmem:[%s1776_s3] sm:$0x7]  ;;  %s1523_s3 = smov [#allocation8]  }
 0x3cf   :  { %1326 = vmatpush3.bf16.msra.mxu0 %v981_v39  ;;  %1327 = vmatprep.mubr.msk.bf16.mxu0 %vm1510_vm0, %v1509_v0  ;;  %v1138_v38 = vrot.slane %v1099_v37, %v1137_v35  ;;  %v1144_v39 = vrot.slane %v1099_v37, %v1143_v36  ;;  %s1154_s19 = sshll.u32 %s1523_s3, 4  ;;  %s1155_s19 = int_to_ptr.vmem [resolvable:$true] %s1154_s19 }
 0x3d0   :  { %s1476_s20 = scalar_lea.vmem %s1155_s19, 256  ;;  %p1481_p2 = scmp.lt.s32.totalorder %s1155_s19, %s1155_s19 }
 0x3d1   :  { %p1477_p1 = scmp.ne.s32.totalorder %s1155_s19, %s1476_s20  ;;  %p1482_p3 = scmp.lt.s32.totalorder %s1476_s20, %s1476_s20 }
 0x3d3   :  { %p1483_p4 = por %p1482_p3, %p1481_p2 }
 0x3d5   :  { %p1484_p5 = pnand %p1483_p4, %p1477_p1 }
 0x3d6   :  { %1328 = vmatmul.mubr.msk.bf16.vlgmr.msra.gmra.mxu0 %vm128_vm2, %v974_v41  ;;  %v1105_v41 = vrot.slane %v1099_v37, %v1104_v40 }
 0x42b   :  { %v230_v42 = vpop.f32.mrf.mxu0 }
 0x42d   :  { %v1245_v43 = vpop.f32.mrf.mxu0 }
 0x42f   :  { %v233_v44 = vpop.f32.mrf.mxu0 }
 0x431   :  { %v1246_v7 = vpop.f32.mrf.mxu0 }
 0x433   :  { %v340_v45 = vpop.f32.mrf.mxu0 }
 0x435   :  { %v1257_v46 = vpop.f32.mrf.mxu0 }
 0x437   :  { %v343_v47 = vpop.f32.mrf.mxu0 }
 0x439   :  { %v1258_v48 = vpop.f32.mrf.mxu0 }
 0x43b   :  { %v450_v49 = vpop.f32.mrf.mxu0 }
 0x43d   :  { %v1269_v50 = vpop.f32.mrf.mxu0 }
 0x43f   :  { %v453_v51 = vpop.f32.mrf.mxu0 }
 0x441   :  { %v1270_v52 = vpop.f32.mrf.mxu0 }
 0x468   :  { %v560_v53 = vpop.f32.mrf.mxu0 }
 0x46a   :  { %v1281_v54 = vpop.f32.mrf.mxu0 }
 0x46c   :  { %v563_v56 = vpop.f32.mrf.mxu0 }
 0x46e   :  { %v1282_v57 = vpop.f32.mrf.mxu0 }
 0x47e   :  { %v687_v55 = vpop.f32.mrf.mxu0 }
 0x480   :  { %v1293_v58 = vpop.f32.mrf.mxu0 }
 0x482   :  { %v690_v59 = vpop.f32.mrf.mxu0 }
 0x484   :  { %v1294_v60 = vpop.f32.mrf.mxu0 }
 0x486   :  { %v797_v61 = vpop.f32.mrf.mxu0 }
 0x487   :  { %v1361_v63 = vpack.i.bf16 %v797_v61, %v340_v45 }
 0x488   :  { %v1305_v11 = vpop.f32.mrf.mxu0 }
 0x489   :  { %1362 = vrot.lane.b32.xlu1 %v1361_v63, %s1507_s26 }
 0x48a   :  { %v800_v1 = vpop.f32.mrf.mxu0 }
 0x48c   :  { %v1306_v2 = vpop.f32.mrf.mxu0 }
 0x48e   :  { %v907_v6 = vpop.f32.mrf.mxu0 }
 0x48f   :  { %v1366_v8 = vpack.i.bf16 %v907_v6, %v450_v49 }
 0x490   :  { %v1317_v9 = vpop.f32.mrf.mxu0 }
 0x491   :  { %1367 = vrot.lane.b32.xlu1 %v1366_v8, %s1521_s15 }
 0x492   :  { %v910_v10 = vpop.f32.mrf.mxu0 }
 0x494   :  { %v1318_v12 = vpop.f32.mrf.mxu0 }
 0x496   :  { %v1017_v13 = vpop.f32.mrf.mxu0 }
 0x497   :  { %v1371_v14 = vpack.i.bf16 %v1017_v13, %v560_v53 }
 0x498   :  { %v1329_v15 = vpop.f32.mrf.mxu0 }
 0x499   :  { %1372 = vrot.lane.b32.xlu0 %v1371_v14, %s1522_s16 }
 0x49a   :  { %v1020_v16 = vpop.f32.mrf.mxu0 }
 0x49c   :  { %v1330_v17 = vpop.f32.mrf.mxu0 }
 0x4fb   :  { %v1363_v18 = vpop.permute.xlu1 %1362 }
 0x4fc   :  { %v1365_v19 = vunpack.i.h.bf16 %v1363_v18  ;;  %v1364_v20 = vunpack.i.l.bf16 %v1363_v18 }
 0x4fe   :  { %v1035_v24 = vsel %vm128_vm2, %v687_v55, %v1365_v19  ;;  %v578_v25 = vsel %vm128_vm2, %v230_v42, %v1364_v20 }
 0x503   :  { %v1368_v0 = vpop.permute.xlu1 %1367 }
 0x504   :  { %v1370_v21 = vunpack.i.h.bf16 %v1368_v0  ;;  %v1369_v22 = vunpack.i.l.bf16 %v1368_v0 }
 0x506   :  { %v1036_v28 = vsel %vm579_vm4, %v1035_v24, %v1370_v21  ;;  %v580_v29 = vsel %vm579_vm4, %v578_v25, %v1369_v22 }
 0x50b   :  { %v1373_v23 = vpop.permute.xlu0 %1372 }
 0x50c   :  { %v1375_v26 = vunpack.i.h.bf16 %v1373_v23  ;;  %v1374_v27 = vunpack.i.l.bf16 %v1373_v23 }
 0x50e   :  { %v1037_v30 = vsel %vm581_vm5, %v1036_v28, %v1375_v26  ;;  %v582_v31 = vsel %vm581_vm5, %v580_v29, %v1374_v27 }
 0x50f   :  { %v1038_v32 = vpack.c.bf16 %v1037_v30, %v582_v31 }
 0x511   :  { %1336 = vmatmul.mubr.msk.bf16.vlgmr.msra.gmra.mxu1 %vm79_vm1, %v1038_v32 }
 0x5d1   :  { %v1092_v42 = vpop.f32.mrf.mxu1 }
 0x5d2   :  { %v1100_v43 = vadd.f32 %v1092_v42, %v1571_v3 }
 0x5d3   :  { %v1337_v44 = vpop.f32.mrf.mxu1 }
 0x5d4   :  { %v1106_v7 = vadd.f32 %v1105_v41, %v1100_v43 }
 0x5d5   :  { %v1095_v45 = vpop.f32.mrf.mxu1 }
 0x5d6   :  { %v1101_v46 = vadd.f32 %v1095_v45, %v1573_v4  ;;  %v1108_v47 = vsel %vm79_vm1, %v1106_v7, 0.0 }
 0x5d7   :  { %1109 = vadd.xlane.f32.xlu1 %v1108_v47  ;;  %v1338_v48 = vpop.f32.mrf.mxu1 }
 0x5d8   :  { %v1107_v49 = vadd.f32 %v1105_v41, %v1101_v46 }
 0x5da   :  { %v1111_v50 = vsel %vm79_vm1, %v1107_v49, 0.0 }
 0x5db   :  { %1112 = vadd.xlane.f32.xlu0 %v1111_v50 }
 0x660   :  { %v1110_v51 = vpop.xlane.xlu1 %1109 }
 0x661   :  { %v1115_v52 = vmul.f32 0.03125, %v1110_v51 }
 0x663   :  { %v1117_v53 = vsub.f32 %v1106_v7, %v1115_v52 }
 0x664   :  { %v1113_v54 = vpop.xlane.xlu0 %1112 }
 0x665   :  { %v1116_v56 = vmul.f32 0.03125, %v1113_v54  ;;  %v1119_v57 = vmul.f32 %v1117_v53, %v1117_v53 }
 0x667   :  { %v1118_v3 = vsub.f32 %v1107_v49, %v1116_v56  ;;  %v1121_v55 = vsel %vm79_vm1, %v1119_v57, 0.0 }
 0x668   :  { %1122 = vadd.xlane.f32.xlu0 %v1121_v55 }
 0x669   :  { %v1120_v58 = vmul.f32 %v1118_v3, %v1118_v3 }
 0x66b   :  { %v1124_v4 = vsel %vm79_vm1, %v1120_v58, 0.0 }
 0x66c   :  { %1125 = vadd.xlane.f32.xlu1 %v1124_v4 }
 0x6f1   :  { %v1123_v59 = vpop.xlane.xlu0 %1122 }
 0x6f2   :  { %v1127_v60 = vmul.f32 0.03125, %v1123_v59 }
 0x6f4   :  { %v1129_v61 = vadd.f32 1e-05, %v1127_v60 }
 0x6f5   :  { %v1126_v62 = vpop.xlane.xlu1 %1125 }
 0x6f6   :  { %1412 = vrsqrt.f32 %v1129_v61  ;;  %v1128_v63 = vmul.f32 0.03125, %v1126_v62 }
 0x6f8   :  { %v1130_v11 = vadd.f32 1e-05, %v1128_v63 }
 0x6fa   :  { %1414 = vrsqrt.f32 %v1130_v11 }
 0x703   :  { %v1413_v1 = vpop.eup %1412 }
 0x704   :  { %v1133_v2 = vmul.f32 %v1413_v1, %v1117_v53 }
 0x706   :  { %v1139_v5 = vmul.f32 %v1138_v38, %v1133_v2 }
 0x707   :  { %v1415_v6 = vpop.eup %1414 }
 0x708   :  { %v1134_v8 = vmul.f32 %v1415_v6, %v1118_v3  ;;  %v1145_v9 = vadd.f32 %v1144_v39, %v1139_v5 }
 0x70a   :  { %v1140_v10 = vmul.f32 %v1138_v38, %v1134_v8  ;;  %1147 = vst.msk [vmem:[#allocation8] sm:$0xff] %vm79_vm1, %v1145_v9 }
 0x70c   :  { %v1146_v12 = vadd.f32 %v1144_v39, %v1140_v10 }
 0x70e   :  { %1148 = vst.msk [vmem:[#allocation8 + $0x8] sm:$0xff] %vm79_vm1, %v1146_v12 }
 0x70f   :  { %1487 = shalt.err (!%p1484_p5)
}
 0x710   :  { %1160 = dma.vmem_to_hbm [thread:$0]  %s1155_s19, 256, %s1777_s4, [#allocation4], %s1506_s25, %s1506_s25, %s1507_s26  }
 0x711   :  { %1500 = dma.done.wait [#allocation4], 256  }
 0x712   :  { %1501 = vsyncadd [#allocation4], 4294967040 }
 0x713   :  { %1164 = vsyncpa [#allocation3], 1 }
 0x714   :  { %1165 = vsyncpa [#allocation6], 1 }
 0x715   :  { %1166 = vsyncpa [#allocation4], 1 }

</bundles_post_ra>
